<compile_context>
chip_gen: v5e
topology: v5e:2x2
jax: 0.10.0
libtpu: 0.0.40
codegen_flags: <defaults>
</compile_context>

<pallas_src>
import functools

import jax
import jax.numpy as jnp
from jax.experimental import pallas as pl
from jax.experimental.pallas import tpu as pltpu


def _copy_slab_kernel(table_ref, out_ref, sem, *, slab_rows):
    """One grid step: DMA `slab_rows` rows of the table straight HBM -> HBM."""
    i = pl.program_id(0)
    start = pl.multiple_of(i * slab_rows, slab_rows)
    cp = pltpu.make_async_copy(
        table_ref.at[pl.ds(start, slab_rows)],   # (slab_rows, E) table rows
        out_ref.at[pl.ds(start, slab_rows)],     # same rows of the output slab
        sem,
    )
    cp.start()
    cp.wait()


def _round_up(x, m):
    return (x + m - 1) // m * m


def position_embedding_learned(position, emb_table, seq_len, *,
                               min_slab_rows=512, validate_position=False):
    """
    position:  (1, max_len) int  -- the registered arange buffer
    emb_table: (max_len, E)      -- nn.Embedding(max_len, E) weight
    seq_len:   int               -- x.size(1)
    returns:   (1, seq_len, E)   == emb_table[position[:, :seq_len]]

    NOTE: the single-DMA fast path relies on `position` being arange starting
    at 0 (which is how the module constructs it).  Any other position contents
    would need a per-row gather instead.
    """
    max_len, E = emb_table.shape
    assert 0 < seq_len <= max_len

    if validate_position:
        # Host-side sanity check of the arange property (outside any jit).
        expected = jnp.arange(seq_len, dtype=jnp.int32)
        got = position.reshape(-1)[:seq_len].astype(jnp.int32)
        assert bool(jnp.array_equal(got, expected)), (
            "position buffer must be arange(max_len) for the DMA fast path")

    # 8-row aligned length (DMA itself does not require alignment; this just
    # keeps slab starts tile-aligned). Clamped to max_len so no assert can fire.
    L_pad = min(_round_up(seq_len, 8), max_len)

    # v7x megacore: two equal half-slabs (one per TensorCore) only when each
    # half is large enough that the extra grid step is negligible; otherwise a
    # single full-slab DMA (strictly best on the 1-TC v5e/v6e chips).
    if L_pad % 16 == 0 and (L_pad // 2) >= min_slab_rows:
        num_slabs = 2
    else:
        num_slabs = 1
    slab_rows = L_pad // num_slabs

    out = pl.pallas_call(
        functools.partial(_copy_slab_kernel, slab_rows=slab_rows),
        out_shape=jax.ShapeDtypeStruct((L_pad, E), emb_table.dtype),
        grid=(num_slabs,),
        in_specs=[pl.BlockSpec(memory_space=pl.ANY)],    # raw HBM table ref
        out_specs=pl.BlockSpec(memory_space=pl.ANY),     # raw HBM output ref
        scratch_shapes=[pltpu.SemaphoreType.DMA],
        compiler_params=pltpu.CompilerParams(
            dimension_semantics=("parallel",)),
    )(emb_table)

    if L_pad != seq_len:
        # TODO(synk): fuse this trim into the consumer (it is a second HBM pass
        # for unaligned seq_len); the aligned demo path never takes it.
        out = out[:seq_len]
    return out[None, :, :]   # leading batch-1 dim, as in the PyTorch module


if __name__ == "__main__":
    # Small shapes consistent with the module: num_model = 128 (lane-dense),
    # max_len = 512, x of shape (batch=2, seq=256, d_model=128); forward only
    # uses x.size(1).
    num_model = 128
    max_len = 512
    N, L = 2, 256

    key = jax.random.PRNGKey(0)
    k_x, k_emb = jax.random.split(key, 2)

    x = jax.random.normal(k_x, (N, L, num_model), dtype=jnp.float32)

    # registered buffer: position = arange(max_len)[None, :]
    position = jnp.arange(max_len, dtype=jnp.int32)[None, :]

    # nn.Embedding weight with kaiming_normal_(mode='fan_in'):
    # fan_in = num_model, gain = sqrt(2)  ->  std = sqrt(2 / num_model)
    emb_table = jax.random.normal(
        k_emb, (max_len, num_model), dtype=jnp.float32) * (2.0 / num_model) ** 0.5

    out = position_embedding_learned(position, emb_table, x.shape[1],
                                     validate_position=True)
    out = jax.block_until_ready(out)

    # Plain-JAX reference: embedding lookup of position[:, :L]
    ref = emb_table[position[0, :L]][None, :, :]

    assert out.shape == (1, L, num_model), out.shape
    assert jnp.array_equal(out, ref)

    print("KERNEL_OK")
</pallas_src>

<mosaic_0001>
module attributes {stable_mosaic.version = 11 : i64} {
  func.func @_copy_slab_kernel(%arg0: i32, %arg1: memref<512x128xf32, #tpu.memory_space<any>>, %arg2: memref<256x128xf32, #tpu.memory_space<any>>, %arg3: memref<!tpu.dma_semaphore, #tpu.memory_space<semaphore_mem>>) attributes {dimension_semantics = [#tpu.dimension_semantics<parallel>], iteration_bounds = array<i64: 1>, scalar_prefetch = 0 : i64, scratch_operands = 1 : i64, tpu.core_type = #tpu.core_type<tc>, window_params = [{}, {}]} {
    %c256_i32 = arith.constant 256 : i32
    %0 = arith.muli %arg0, %c256_i32 : i32
    %1 = tpu.assume_multiple %0, 256 : i32
    %c0_i32 = arith.constant 0 : i32
    %2 = tpu.memref_slice %arg1[%1, %c0_i32] : memref<512x128xf32, #tpu.memory_space<any>> -> memref<256x128xf32, #tpu.memory_space<any>>
    %c0_i32_0 = arith.constant 0 : i32
    %3 = tpu.memref_slice %arg2[%1, %c0_i32_0] : memref<256x128xf32, #tpu.memory_space<any>> -> memref<256x128xf32, #tpu.memory_space<any>>
    tpu.enqueue_dma source(%2 : memref<256x128xf32, #tpu.memory_space<any>>) target(%3 : memref<256x128xf32, #tpu.memory_space<any>>) target_semaphore(%arg3 : memref<!tpu.dma_semaphore, #tpu.memory_space<semaphore_mem>>)
    %c0_i32_1 = arith.constant 0 : i32
    %4 = tpu.memref_slice %arg1[%1, %c0_i32_1] : memref<512x128xf32, #tpu.memory_space<any>> -> memref<256x128xf32, #tpu.memory_space<any>>
    %c0_i32_2 = arith.constant 0 : i32
    %5 = tpu.memref_slice %arg2[%1, %c0_i32_2] : memref<256x128xf32, #tpu.memory_space<any>> -> memref<256x128xf32, #tpu.memory_space<any>>
    tpu.wait_dma2 semaphore(%arg3 : memref<!tpu.dma_semaphore, #tpu.memory_space<semaphore_mem>>) src(%4 : memref<256x128xf32, #tpu.memory_space<any>>) dst(%5 : memref<256x128xf32, #tpu.memory_space<any>>)
    return
  }
}

</mosaic_0001>

<bundles_post_ra>
// kernel: tpu_custom_call.1
= control target key start
LH: loop header
LB: loop body
LE: loop exit
PB: predicated region body
PF: predicated region fallthrough
CT: control target
= control target key end

     0   :  { %s35_s12 = smov [#allocation2]   ;;  %s36_s13 = smov [#allocation3]   ;;  %s54_s0 = inlined_call_operand.hbm [shape: f32[512,128], index: 0, kind: input, shape index: {}]   ;;  %s55_s1 = inlined_call_operand.hbm [shape: f32[256,128], index: 1, kind: output, shape index: {}]  }
   0x1   :  { %s13_s8 = sshll.u32 %s54_s0, 4  ;;  %s15_s11 = sshll.u32 %s55_s1, 4  ;;  %s14_s8 = int_to_ptr.hbm [resolvable:$true] %s13_s8  ;;  %s16_s11 = int_to_ptr.hbm [resolvable:$true] %s15_s11 }
   0x2   :  { %s37_s14 = smov 0  }
   0x3   :  { %19 = dma.general %s14_s8, 4096, %s16_s11, %s35_s12, %s36_s13, [#allocation4], %s37_s14, 0  }
   0x4   :  { %33 = dma.done.wait [#allocation2], 4096 }
   0x5   :  { %34 = vsyncadd [#allocation2], 4294963200 }
   0x6   :  { %23 = vsyncmov [#allocation2] }
   0x9   :  { %s24_s15 = vpop.sfrf %23 }
   0xa   :  { %p29_p0 = scmp.ne.s32.totalorder %s24_s15, 0 }
   0xc   :  { %28 = shalt.err (%p29_p0)  }

</bundles_post_ra>
